<compile_context>
chip_gen: v6e
topology: v6e:2x2x1
jax: 0.10.0
libtpu: 0.0.40
codegen_flags: <defaults>
</compile_context>

<pallas_src>
import math
from functools import partial

import jax
import jax.numpy as jnp
from jax import lax
from jax.experimental import pallas as pl
from jax.experimental.pallas import tpu as pltpu

_BN_EPS = 1e-5
_TAPS = [(ky - 1, kx - 1) for ky in range(3) for kx in range(3)]  # row-major


# ----------------------------------------------------------------------------
# Fused block kernel
# ----------------------------------------------------------------------------
def _make_block_kernel(num_layers, trans, H, W, cin, layer_meta, batch_block,
                       matmul_dtype):
    HW = H * W

    def kernel(*refs):
        # ---- parse refs: inputs first, then outputs --------------------------
        pos = 0
        m_ref = refs[pos]; pos += 1                       # (8, HW) masks
        x_ref = refs[pos]; pos += 1                       # (Nb, Cin, HW)
        layer_refs = []
        for _ in range(num_layers):
            layer_refs.append(refs[pos:pos + 4]); pos += 4        # w1,b1,w3,b3
        if trans:
            wt_ref, bt_ref = refs[pos], refs[pos + 1]; pos += 2
        feat_ref = refs[pos]; pos += 1                    # (Nb, Ctot, HW)
        t_ref = refs[pos] if trans else None              # (Nb, Ct, HW)

        masks = m_ref[...]                                # f32, grid-constant

        for b in range(batch_block):                      # static unroll
            # x is the channel prefix of the concatenated feature map.
            x_b = x_ref[b]
            feat_ref[b, :cin, :] = x_b.astype(feat_ref.dtype)
            feat_mm = x_b.astype(matmul_dtype)            # running concat

            off = cin
            for i in range(num_layers):
                w1_ref, b1_ref, w3_ref, b3_ref = layer_refs[i]
                ninner, g = layer_meta[i]

                # 1x1 bottleneck conv (+ folded BN) + ReLU: ONE big-K matmul.
                h1 = jnp.dot(w1_ref[...], feat_mm,
                             preferred_element_type=jnp.float32)
                h1 = jnp.maximum(h1 + b1_ref[...], 0.0)   # (nInner, HW) f32

                # 3x3 conv (stride 1, pad 1) as ONE matmul over the stacked
                # shifted activation (9*nInner, HW); masks handle the zero pad.
                parts = []
                for k, (dy, dx) in enumerate(_TAPS):
                    if dy == 0 and dx == 0:
                        parts.append(h1)                  # center tap
                    else:
                        m_idx = k if k < 4 else k - 1
                        shift = (-(dy * W + dx)) % HW     # static
                        parts.append(pltpu.roll(h1, shift, axis=1)
                                     * masks[m_idx:m_idx + 1, :])
                stacked = jnp.concatenate(parts, axis=0).astype(matmul_dtype)

                h2 = jnp.dot(w3_ref[...], stacked,        # (G, HW)
                             preferred_element_type=jnp.float32)
                h2 = jnp.maximum(h2 + b3_ref[...], 0.0)

                feat_ref[b, off:off + g, :] = h2.astype(feat_ref.dtype)
                feat_mm = jnp.concatenate(
                    [feat_mm, h2.astype(matmul_dtype)], axis=0)
                off += g

            if trans:
                out = jnp.dot(wt_ref[...], feat_mm,
                              preferred_element_type=jnp.float32)
                t_ref[b, :, :] = jnp.maximum(
                    out + bt_ref[...], 0.0).astype(t_ref.dtype)

    return kernel


# ----------------------------------------------------------------------------
# _BlockNormal forward (wrapper)
# ----------------------------------------------------------------------------
def block_normal_forward(x_nchw, params, num_layers, trans, batch_block=None,
                         matmul_dtype=jnp.bfloat16):
    N, Cin, H, W = x_nchw.shape
    HW = H * W
    x_flat = x_nchw.reshape(N, Cin, HW)

    if batch_block is None:
        batch_block = 1
        if N >= 4:                     # amortize per-grid-step overhead while
            for nb in (8, 4, 2):       # keeping >=2 grid steps (v7x megacore)
                if N % nb == 0 and N // nb >= 2:
                    batch_block = nb
                    break
    assert N % batch_block == 0
    grid = (N // batch_block,)

    # Boundary-validity masks for the 8 non-center 3x3 taps, precomputed once
    # and passed as a grid-constant (8, HW) input.
    lane = jnp.arange(HW, dtype=jnp.int32)
    row, col = lane // W, lane % W
    mask_rows = []
    for dy, dx in _TAPS:
        if dy == 0 and dx == 0:
            continue
        ok = ((row + dy) >= 0) & ((row + dy) < H) & \
             ((col + dx) >= 0) & ((col + dx) < W)
        mask_rows.append(ok.astype(jnp.float32))
    masks = jnp.stack(mask_rows, axis=0)                        # (8, HW)

    args = [masks, x_flat]
    in_specs = [
        pl.BlockSpec((8, HW), lambda n: (0, 0)),
        pl.BlockSpec((batch_block, Cin, HW), lambda n: (n, 0, 0)),
    ]

    layer_meta = []
    offs = [Cin]
    for p in params["layers"]:
        # Fold eval-mode BN scale into the conv weights; bf16 MXU operands.
        w1 = (p["w1"] * p["s1"][None, :]).T.astype(matmul_dtype)   # (nI, Ci)
        b1 = p["b1"].reshape(-1, 1).astype(jnp.float32)
        ninner, ci = w1.shape
        g = p["w3"].shape[3]
        w3 = p["w3"] * p["s3"][None, None, None, :]                # (3,3,nI,G)
        w3 = jnp.transpose(w3, (3, 0, 1, 2)).reshape(g, 9 * ninner)
        w3 = w3.astype(matmul_dtype)                               # (G, 9*nI)
        b3 = p["b3"].reshape(-1, 1).astype(jnp.float32)
        args += [w1, b1, w3, b3]
        in_specs += [
            pl.BlockSpec((ninner, ci), lambda n: (0, 0)),
            pl.BlockSpec((ninner, 1), lambda n: (0, 0)),
            pl.BlockSpec((g, 9 * ninner), lambda n: (0, 0)),
            pl.BlockSpec((g, 1), lambda n: (0, 0)),
        ]
        layer_meta.append((ninner, g))
        offs.append(offs[-1] + g)
    ctot = offs[-1]

    out_shapes = [jax.ShapeDtypeStruct((N, ctot, HW), x_nchw.dtype)]
    out_specs = [pl.BlockSpec((batch_block, ctot, HW), lambda n: (n, 0, 0))]

    ct = 0
    if trans:
        pt = params["trans"]
        wt = (pt["w"] * pt["s"][None, :]).T.astype(matmul_dtype)   # (Ct, Ctot)
        bt = pt["b"].reshape(-1, 1).astype(jnp.float32)
        ct = wt.shape[0]
        args += [wt, bt]
        in_specs += [pl.BlockSpec((ct, ctot), lambda n: (0, 0)),
                     pl.BlockSpec((ct, 1), lambda n: (0, 0))]
        out_shapes.append(jax.ShapeDtypeStruct((N, ct, HW), x_nchw.dtype))
        out_specs.append(pl.BlockSpec((batch_block, ct, HW),
                                      lambda n: (n, 0, 0)))

    # Explicit VMEM budget: double-buffered blocks + in-kernel temporaries.
    mm_bytes = 2 if matmul_dtype == jnp.bfloat16 else 4
    max_ni = max((m[0] for m in layer_meta), default=1)
    weight_bytes = sum(int(a.size) * a.dtype.itemsize for a in args[2:])
    in_blk = 8 * HW * 4 + batch_block * Cin * HW * 4 + weight_bytes
    out_blk = batch_block * (ctot + ct) * HW * 4
    tmp_bytes = (9 * max_ni * HW * (4 + mm_bytes)
                 + 3 * ctot * HW * (4 + mm_bytes))
    vmem_limit = int(min(64 * 2 ** 20,
                         max(32 * 2 ** 20, 3 * (in_blk + out_blk)
                             + 4 * tmp_bytes)))

    kernel = _make_block_kernel(num_layers, trans, H, W, Cin, layer_meta,
                                batch_block, matmul_dtype)
    outs = pl.pallas_call(
        kernel,
        out_shape=tuple(out_shapes),
        grid_spec=pltpu.PrefetchScalarGridSpec(
            num_scalar_prefetch=0,
            grid=grid,
            in_specs=in_specs,
            out_specs=tuple(out_specs),
        ),
        compiler_params=pltpu.CompilerParams(
            dimension_semantics=("parallel",),
            vmem_limit_bytes=vmem_limit),
    )(*args)

    feat = outs[0].reshape(N, ctot, H, W)
    output = [feat[:, :c] for c in offs]          # x after 0..num_layers layers
    x_out = outs[1].reshape(N, ct, H, W) if trans else feat
    return x_out, output


# ----------------------------------------------------------------------------
# Deterministic parameter construction (synthetic, no checkpoint)
# ----------------------------------------------------------------------------
def _fold_bn(gamma, beta, mean, var):
    scale = gamma / jnp.sqrt(var + _BN_EPS)
    bias = beta - mean * scale
    return scale, bias


def _init_bn(key, c):
    k1, k2, k3, k4 = jax.random.split(key, 4)
    gamma = jax.random.uniform(k1, (c,), jnp.float32, 0.5, 1.5)
    beta = jax.random.normal(k2, (c,), jnp.float32) * 0.1
    mean = jax.random.normal(k3, (c,), jnp.float32) * 0.1
    var = jax.random.uniform(k4, (c,), jnp.float32, 0.5, 1.5)
    return _fold_bn(gamma, beta, mean, var)


def init_block_normal_params(key, num_layers, in_channels, growth_rate,
                             reduction_rate, trans, bottleneck_factor):
    params = {"layers": []}
    for i in range(num_layers):
        cin = in_channels + i * growth_rate
        ninner = min(cin, bottleneck_factor * growth_rate)   # bottleneck width
        key, k1, k2, k3, k4 = jax.random.split(key, 5)
        w1 = jax.random.normal(k1, (cin, ninner), jnp.float32) / math.sqrt(cin)
        s1, b1 = _init_bn(k2, ninner)
        w3 = jax.random.normal(k3, (3, 3, ninner, growth_rate),
                               jnp.float32) / math.sqrt(9 * ninner)
        s3, b3 = _init_bn(k4, growth_rate)
        params["layers"].append(dict(w1=w1, s1=s1, b1=b1, w3=w3, s3=s3, b3=b3))
    if trans:
        ctot = in_channels + num_layers * growth_rate
        ct = math.floor(1.0 * reduction_rate * ctot)
        key, k1, k2 = jax.random.split(key, 3)
        wt = jax.random.normal(k1, (ctot, ct), jnp.float32) / math.sqrt(ctot)
        st, bt = _init_bn(k2, ct)
        params["trans"] = dict(w=wt, s=st, b=bt)
    return params


# ----------------------------------------------------------------------------
# Pure-XLA f32 reference (same eval-mode BN folding) for a numerical check
# ----------------------------------------------------------------------------
def _ref_forward(x, params, num_layers, trans):
    prec = lax.Precision.HIGHEST
    dn = ("NCHW", "OIHW", "NCHW")

    def cbr1x1(x, w, s, b):                      # w: (Cin, Cout)
        k = jnp.transpose(w, (1, 0))[:, :, None, None]
        y = lax.conv_general_dilated(x, k, (1, 1), "VALID",
                                     dimension_numbers=dn, precision=prec)
        return jnp.maximum(y * s[None, :, None, None]
                           + b[None, :, None, None], 0.0)

    out = [x]
    for i in range(num_layers):
        p = params["layers"][i]
        h = cbr1x1(x, p["w1"], p["s1"], p["b1"])
        k3 = jnp.transpose(p["w3"], (3, 2, 0, 1))            # HWIO -> OIHW
        y = lax.conv_general_dilated(h, k3, (1, 1), ((1, 1), (1, 1)),
                                     dimension_numbers=dn, precision=prec)
        h = jnp.maximum(y * p["s3"][None, :, None, None]
                        + p["b3"][None, :, None, None], 0.0)
        x = jnp.concatenate([x, h], axis=1)
        out.append(x)
    if trans:
        pt = params["trans"]
        x = cbr1x1(x, pt["w"], pt["s"], pt["b"])
    return x, out


if __name__ == "__main__":
    NUM_LAYERS = 2
    IN_CHANNELS = 4
    GROWTH_RATE = 4
    REDUCTION_RATE = 0.5
    TRANS = True
    BOTTLENECK_FACTOR = 2
    N, H, W = 2, 16, 16

    key = jax.random.PRNGKey(0)
    kx, kp = jax.random.split(key)
    x = jax.random.normal(kx, (N, IN_CHANNELS, H, W), jnp.float32)   # NCHW
    params = init_block_normal_params(kp, NUM_LAYERS, IN_CHANNELS, GROWTH_RATE,
                                      REDUCTION_RATE, TRANS, BOTTLENECK_FACTOR)

    fwd = jax.jit(partial(block_normal_forward,
                          num_layers=NUM_LAYERS, trans=TRANS))
    x_out, output = fwd(x, params)
    x_out = jax.block_until_ready(x_out)
    output = jax.block_until_ready(output)

    ctot = IN_CHANNELS + NUM_LAYERS * GROWTH_RATE
    assert x_out.shape == (N, math.floor(REDUCTION_RATE * ctot), H, W)
    assert [o.shape[1] for o in output] == \
        [IN_CHANNELS + i * GROWTH_RATE for i in range(NUM_LAYERS + 1)]
    assert bool(jnp.all(jnp.isfinite(x_out)))

    # Numerical check against the pure-f32 XLA reference.  Kernel matmuls use
    # bf16 operands with f32 accumulation -> relaxed tolerance.
    x_ref, out_ref = _ref_forward(x, params, NUM_LAYERS, TRANS)
    max_err = float(jnp.max(jnp.abs(x_out - x_ref)))
    assert bool(jnp.allclose(x_out, x_ref, rtol=2e-2, atol=2e-2)), max_err
    for a, b in zip(output, out_ref):
        assert bool(jnp.allclose(a, b, rtol=2e-2, atol=2e-2))

    print("KERNEL_OK")
</pallas_src>

<mosaic_0001>
module attributes {stable_mosaic.version = 11 : i64} {
  func.func @kernel(%arg0: i32, %arg1: memref<8x256xf32, #tpu.memory_space<vmem>>, %arg2: memref<1x4x256xf32, #tpu.memory_space<vmem>>, %arg3: memref<4x4xbf16, #tpu.memory_space<vmem>>, %arg4: memref<4x1xf32, #tpu.memory_space<vmem>>, %arg5: memref<4x36xbf16, #tpu.memory_space<vmem>>, %arg6: memref<4x1xf32, #tpu.memory_space<vmem>>, %arg7: memref<8x8xbf16, #tpu.memory_space<vmem>>, %arg8: memref<8x1xf32, #tpu.memory_space<vmem>>, %arg9: memref<4x72xbf16, #tpu.memory_space<vmem>>, %arg10: memref<4x1xf32, #tpu.memory_space<vmem>>, %arg11: memref<6x12xbf16, #tpu.memory_space<vmem>>, %arg12: memref<6x1xf32, #tpu.memory_space<vmem>>, %arg13: memref<1x12x256xf32, #tpu.memory_space<vmem>>, %arg14: memref<1x6x256xf32, #tpu.memory_space<vmem>>) attributes {dimension_semantics = [#tpu.dimension_semantics<parallel>], iteration_bounds = array<i64: 2>, scalar_prefetch = 0 : i64, scratch_operands = 0 : i64, tpu.core_type = #tpu.core_type<tc>, window_params = [{pipeline_mode = #tpu.pipeline_mode<synchronous>, transform_indices = @transform_0, window_bounds = array<i64: 8, 256>}, {transform_indices = @transform_1, window_bounds = array<i64: 1, 4, 256>}, {pipeline_mode = #tpu.pipeline_mode<synchronous>, transform_indices = @transform_2, window_bounds = array<i64: 4, 4>}, {pipeline_mode = #tpu.pipeline_mode<synchronous>, transform_indices = @transform_3, window_bounds = array<i64: 4, 1>}, {pipeline_mode = #tpu.pipeline_mode<synchronous>, transform_indices = @transform_4, window_bounds = array<i64: 4, 36>}, {pipeline_mode = #tpu.pipeline_mode<synchronous>, transform_indices = @transform_5, window_bounds = array<i64: 4, 1>}, {pipeline_mode = #tpu.pipeline_mode<synchronous>, transform_indices = @transform_6, window_bounds = array<i64: 8, 8>}, {pipeline_mode = #tpu.pipeline_mode<synchronous>, transform_indices = @transform_7, window_bounds = array<i64: 8, 1>}, {pipeline_mode = #tpu.pipeline_mode<synchronous>, transform_indices = @transform_8, window_bounds = array<i64: 4, 72>}, {pipeline_mode = #tpu.pipeline_mode<synchronous>, transform_indices = @transform_9, window_bounds = array<i64: 4, 1>}, {pipeline_mode = #tpu.pipeline_mode<synchronous>, transform_indices = @transform_10, window_bounds = array<i64: 6, 12>}, {pipeline_mode = #tpu.pipeline_mode<synchronous>, transform_indices = @transform_11, window_bounds = array<i64: 6, 1>}, {transform_indices = @transform_12, window_bounds = array<i64: 1, 12, 256>}, {transform_indices = @transform_13, window_bounds = array<i64: 1, 6, 256>}]} {
    %c0 = arith.constant 0 : index
    %c0_0 = arith.constant 0 : index
    %0 = vector.load %arg1[%c0, %c0_0] : memref<8x256xf32, #tpu.memory_space<vmem>>, vector<8x256xf32>
    %c0_1 = arith.constant 0 : index
    %c0_2 = arith.constant 0 : index
    %c0_3 = arith.constant 0 : index
    %1 = vector.load %arg2[%c0_1, %c0_2, %c0_3] : memref<1x4x256xf32, #tpu.memory_space<vmem>>, vector<1x4x256xf32>
    %2 = vector.shape_cast %1 : vector<1x4x256xf32> to vector<4x256xf32>
    %c0_4 = arith.constant 0 : index
    %c0_5 = arith.constant 0 : index
    %c0_6 = arith.constant 0 : index
    %3 = vector.load %arg13[%c0_4, %c0_5, %c0_6] : memref<1x12x256xf32, #tpu.memory_space<vmem>>, vector<1x4x256xf32>
    %4 = vector.shape_cast %3 : vector<1x4x256xf32> to vector<4x256xf32>
    %5 = vector.shape_cast %2 : vector<4x256xf32> to vector<1x4x256xf32>
    tpu.vector_store %arg13[%c0_4, %c0_5, %c0_6], %5 {strides = array<i32>} : memref<1x12x256xf32, #tpu.memory_space<vmem>>, vector<1x4x256xf32>,
    %6 = arith.truncf %2 : vector<4x256xf32> to vector<4x256xbf16>
    %c0_7 = arith.constant 0 : index
    %c0_8 = arith.constant 0 : index
    %7 = vector.load %arg3[%c0_7, %c0_8] : memref<4x4xbf16, #tpu.memory_space<vmem>>, vector<4x4xbf16>
    %cst = arith.constant dense<0.000000e+00> : vector<4x256xf32>
    %8 = tpu.matmul %7, %6, %cst {dimension_numbers = #tpu.dot_dimension_numbers<[1], [0], [0], [1], [0, 0, 1, 1], [], []>} : vector<4x4xbf16>, vector<4x256xbf16>, vector<4x256xf32> -> vector<4x256xf32>
    %c0_9 = arith.constant 0 : index
    %c0_10 = arith.constant 0 : index
    %9 = vector.load %arg4[%c0_9, %c0_10] : memref<4x1xf32, #tpu.memory_space<vmem>>, vector<4x1xf32>
    %10 = vector.broadcast %9 : vector<4x1xf32> to vector<4x256xf32>
    %11 = arith.addf %8, %10 : vector<4x256xf32>
    %cst_11 = arith.constant 0.000000e+00 : f32
    %12 = vector.broadcast %cst_11 : f32 to vector<4x256xf32>
    %13 = arith.maximumf %11, %12 : vector<4x256xf32>
    %c17_i32 = arith.constant 17 : i32
    %14 = tpu.dynamic_rotate %13 by %c17_i32 dim 1 : vector<4x256xf32>, i32 -> vector<4x256xf32>
    %15 = vector.extract_strided_slice %0 {offsets = [0, 0], sizes = [1, 256], strides = [1, 1]} : vector<8x256xf32> to vector<1x256xf32>
    %16 = vector.broadcast %15 : vector<1x256xf32> to vector<4x256xf32>
    %17 = arith.mulf %14, %16 : vector<4x256xf32>
    %c16_i32 = arith.constant 16 : i32
    %18 = tpu.dynamic_rotate %13 by %c16_i32 dim 1 : vector<4x256xf32>, i32 -> vector<4x256xf32>
    %19 = vector.extract_strided_slice %0 {offsets = [1, 0], sizes = [1, 256], strides = [1, 1]} : vector<8x256xf32> to vector<1x256xf32>
    %20 = vector.broadcast %19 : vector<1x256xf32> to vector<4x256xf32>
    %21 = arith.mulf %18, %20 : vector<4x256xf32>
    %c15_i32 = arith.constant 15 : i32
    %22 = tpu.dynamic_rotate %13 by %c15_i32 dim 1 : vector<4x256xf32>, i32 -> vector<4x256xf32>
    %23 = vector.extract_strided_slice %0 {offsets = [2, 0], sizes = [1, 256], strides = [1, 1]} : vector<8x256xf32> to vector<1x256xf32>
    %24 = vector.broadcast %23 : vector<1x256xf32> to vector<4x256xf32>
    %25 = arith.mulf %22, %24 : vector<4x256xf32>
    %c1_i32 = arith.constant 1 : i32
    %26 = tpu.dynamic_rotate %13 by %c1_i32 dim 1 : vector<4x256xf32>, i32 -> vector<4x256xf32>
    %27 = vector.extract_strided_slice %0 {offsets = [3, 0], sizes = [1, 256], strides = [1, 1]} : vector<8x256xf32> to vector<1x256xf32>
    %28 = vector.broadcast %27 : vector<1x256xf32> to vector<4x256xf32>
    %29 = arith.mulf %26, %28 : vector<4x256xf32>
    %c255_i32 = arith.constant 255 : i32
    %30 = tpu.dynamic_rotate %13 by %c255_i32 dim 1 : vector<4x256xf32>, i32 -> vector<4x256xf32>
    %31 = vector.extract_strided_slice %0 {offsets = [4, 0], sizes = [1, 256], strides = [1, 1]} : vector<8x256xf32> to vector<1x256xf32>
    %32 = vector.broadcast %31 : vector<1x256xf32> to vector<4x256xf32>
    %33 = arith.mulf %30, %32 : vector<4x256xf32>
    %c241_i32 = arith.constant 241 : i32
    %34 = tpu.dynamic_rotate %13 by %c241_i32 dim 1 : vector<4x256xf32>, i32 -> vector<4x256xf32>
    %35 = vector.extract_strided_slice %0 {offsets = [5, 0], sizes = [1, 256], strides = [1, 1]} : vector<8x256xf32> to vector<1x256xf32>
    %36 = vector.broadcast %35 : vector<1x256xf32> to vector<4x256xf32>
    %37 = arith.mulf %34, %36 : vector<4x256xf32>
    %c240_i32 = arith.constant 240 : i32
    %38 = tpu.dynamic_rotate %13 by %c240_i32 dim 1 : vector<4x256xf32>, i32 -> vector<4x256xf32>
    %39 = vector.extract_strided_slice %0 {offsets = [6, 0], sizes = [1, 256], strides = [1, 1]} : vector<8x256xf32> to vector<1x256xf32>
    %40 = vector.broadcast %39 : vector<1x256xf32> to vector<4x256xf32>
    %41 = arith.mulf %38, %40 : vector<4x256xf32>
    %c239_i32 = arith.constant 239 : i32
    %42 = tpu.dynamic_rotate %13 by %c239_i32 dim 1 : vector<4x256xf32>, i32 -> vector<4x256xf32>
    %43 = vector.extract_strided_slice %0 {offsets = [7, 0], sizes = [1, 256], strides = [1, 1]} : vector<8x256xf32> to vector<1x256xf32>
    %44 = vector.broadcast %43 : vector<1x256xf32> to vector<4x256xf32>
    %45 = arith.mulf %42, %44 : vector<4x256xf32>
    %46 = tpu.concatenate %17, %21, %25, %29, %13, %33, %37, %41, %45 in 0 : vector<4x256xf32>, vector<4x256xf32>, vector<4x256xf32>, vector<4x256xf32>, vector<4x256xf32>, vector<4x256xf32>, vector<4x256xf32>, vector<4x256xf32>, vector<4x256xf32> -> vector<36x256xf32>
    %47 = arith.truncf %46 : vector<36x256xf32> to vector<36x256xbf16>
    %c0_12 = arith.constant 0 : index
    %c0_13 = arith.constant 0 : index
    %48 = vector.load %arg5[%c0_12, %c0_13] : memref<4x36xbf16, #tpu.memory_space<vmem>>, vector<4x36xbf16>
    %cst_14 = arith.constant dense<0.000000e+00> : vector<4x256xf32>
    %49 = tpu.matmul %48, %47, %cst_14 {dimension_numbers = #tpu.dot_dimension_numbers<[1], [0], [0], [1], [0, 0, 1, 1], [], []>} : vector<4x36xbf16>, vector<36x256xbf16>, vector<4x256xf32> -> vector<4x256xf32>
    %c0_15 = arith.constant 0 : index
    %c0_16 = arith.constant 0 : index
    %50 = vector.load %arg6[%c0_15, %c0_16] : memref<4x1xf32, #tpu.memory_space<vmem>>, vector<4x1xf32>
    %51 = vector.broadcast %50 : vector<4x1xf32> to vector<4x256xf32>
    %52 = arith.addf %49, %51 : vector<4x256xf32>
    %cst_17 = arith.constant 0.000000e+00 : f32
    %53 = vector.broadcast %cst_17 : f32 to vector<4x256xf32>
    %54 = arith.maximumf %52, %53 : vector<4x256xf32>
    %c0_18 = arith.constant 0 : index
    %c4 = arith.constant 4 : index
    %c0_19 = arith.constant 0 : index
    %55 = vector.load %arg13[%c0_18, %c4, %c0_19] : memref<1x12x256xf32, #tpu.memory_space<vmem>>, vector<1x4x256xf32>
    %56 = vector.shape_cast %55 : vector<1x4x256xf32> to vector<4x256xf32>
    %57 = vector.shape_cast %54 : vector<4x256xf32> to vector<1x4x256xf32>
    tpu.vector_store %arg13[%c0_18, %c4, %c0_19], %57 {strides = array<i32>} : memref<1x12x256xf32, #tpu.memory_space<vmem>>, vector<1x4x256xf32>,
    %58 = arith.truncf %54 : vector<4x256xf32> to vector<4x256xbf16>
    %59 = tpu.concatenate %6, %58 in 0 : vector<4x256xbf16>, vector<4x256xbf16> -> vector<8x256xbf16>
    %c0_20 = arith.constant 0 : index
    %c0_21 = arith.constant 0 : index
    %60 = vector.load %arg7[%c0_20, %c0_21] : memref<8x8xbf16, #tpu.memory_space<vmem>>, vector<8x8xbf16>
    %cst_22 = arith.constant dense<0.000000e+00> : vector<8x256xf32>
    %61 = tpu.matmul %60, %59, %cst_22 {dimension_numbers = #tpu.dot_dimension_numbers<[1], [0], [0], [1], [0, 0, 1, 1], [], []>} : vector<8x8xbf16>, vector<8x256xbf16>, vector<8x256xf32> -> vector<8x256xf32>
    %c0_23 = arith.constant 0 : index
    %c0_24 = arith.constant 0 : index
    %62 = vector.load %arg8[%c0_23, %c0_24] : memref<8x1xf32, #tpu.memory_space<vmem>>, vector<8x1xf32>
    %63 = vector.broadcast %62 : vector<8x1xf32> to vector<8x256xf32>
    %64 = arith.addf %61, %63 : vector<8x256xf32>
    %cst_25 = arith.constant 0.000000e+00 : f32
    %65 = vector.broadcast %cst_25 : f32 to vector<8x256xf32>
    %66 = arith.maximumf %64, %65 : vector<8x256xf32>
    %c17_i32_26 = arith.constant 17 : i32
    %67 = tpu.dynamic_rotate %66 by %c17_i32_26 dim 1 : vector<8x256xf32>, i32 -> vector<8x256xf32>
    %68 = vector.extract_strided_slice %0 {offsets = [0, 0], sizes = [1, 256], strides = [1, 1]} : vector<8x256xf32> to vector<1x256xf32>
    %69 = vector.broadcast %68 : vector<1x256xf32> to vector<8x256xf32>
    %70 = arith.mulf %67, %69 : vector<8x256xf32>
    %c16_i32_27 = arith.constant 16 : i32
    %71 = tpu.dynamic_rotate %66 by %c16_i32_27 dim 1 : vector<8x256xf32>, i32 -> vector<8x256xf32>
    %72 = vector.extract_strided_slice %0 {offsets = [1, 0], sizes = [1, 256], strides = [1, 1]} : vector<8x256xf32> to vector<1x256xf32>
    %73 = vector.broadcast %72 : vector<1x256xf32> to vector<8x256xf32>
    %74 = arith.mulf %71, %73 : vector<8x256xf32>
    %c15_i32_28 = arith.constant 15 : i32
    %75 = tpu.dynamic_rotate %66 by %c15_i32_28 dim 1 : vector<8x256xf32>, i32 -> vector<8x256xf32>
    %76 = vector.extract_strided_slice %0 {offsets = [2, 0], sizes = [1, 256], strides = [1, 1]} : vector<8x256xf32> to vector<1x256xf32>
    %77 = vector.broadcast %76 : vector<1x256xf32> to vector<8x256xf32>
    %78 = arith.mulf %75, %77 : vector<8x256xf32>
    %c1_i32_29 = arith.constant 1 : i32
    %79 = tpu.dynamic_rotate %66 by %c1_i32_29 dim 1 : vector<8x256xf32>, i32 -> vector<8x256xf32>
    %80 = vector.extract_strided_slice %0 {offsets = [3, 0], sizes = [1, 256], strides = [1, 1]} : vector<8x256xf32> to vector<1x256xf32>
    %81 = vector.broadcast %80 : vector<1x256xf32> to vector<8x256xf32>
    %82 = arith.mulf %79, %81 : vector<8x256xf32>
    %c255_i32_30 = arith.constant 255 : i32
    %83 = tpu.dynamic_rotate %66 by %c255_i32_30 dim 1 : vector<8x256xf32>, i32 -> vector<8x256xf32>
    %84 = vector.extract_strided_slice %0 {offsets = [4, 0], sizes = [1, 256], strides = [1, 1]} : vector<8x256xf32> to vector<1x256xf32>
    %85 = vector.broadcast %84 : vector<1x256xf32> to vector<8x256xf32>
    %86 = arith.mulf %83, %85 : vector<8x256xf32>
    %c241_i32_31 = arith.constant 241 : i32
    %87 = tpu.dynamic_rotate %66 by %c241_i32_31 dim 1 : vector<8x256xf32>, i32 -> vector<8x256xf32>
    %88 = vector.extract_strided_slice %0 {offsets = [5, 0], sizes = [1, 256], strides = [1, 1]} : vector<8x256xf32> to vector<1x256xf32>
    %89 = vector.broadcast %88 : vector<1x256xf32> to vector<8x256xf32>
    %90 = arith.mulf %87, %89 : vector<8x256xf32>
    %c240_i32_32 = arith.constant 240 : i32
    %91 = tpu.dynamic_rotate %66 by %c240_i32_32 dim 1 : vector<8x256xf32>, i32 -> vector<8x256xf32>
    %92 = vector.extract_strided_slice %0 {offsets = [6, 0], sizes = [1, 256], strides = [1, 1]} : vector<8x256xf32> to vector<1x256xf32>
    %93 = vector.broadcast %92 : vector<1x256xf32> to vector<8x256xf32>
    %94 = arith.mulf %91, %93 : vector<8x256xf32>
    %c239_i32_33 = arith.constant 239 : i32
    %95 = tpu.dynamic_rotate %66 by %c239_i32_33 dim 1 : vector<8x256xf32>, i32 -> vector<8x256xf32>
    %96 = vector.extract_strided_slice %0 {offsets = [7, 0], sizes = [1, 256], strides = [1, 1]} : vector<8x256xf32> to vector<1x256xf32>
    %97 = vector.broadcast %96 : vector<1x256xf32> to vector<8x256xf32>
    %98 = arith.mulf %95, %97 : vector<8x256xf32>
    %99 = tpu.concatenate %70, %74, %78, %82, %66, %86, %90, %94, %98 in 0 : vector<8x256xf32>, vector<8x256xf32>, vector<8x256xf32>, vector<8x256xf32>, vector<8x256xf32>, vector<8x256xf32>, vector<8x256xf32>, vector<8x256xf32>, vector<8x256xf32> -> vector<72x256xf32>
    %100 = arith.truncf %99 : vector<72x256xf32> to vector<72x256xbf16>
    %c0_34 = arith.constant 0 : index
    %c0_35 = arith.constant 0 : index
    %101 = vector.load %arg9[%c0_34, %c0_35] : memref<4x72xbf16, #tpu.memory_space<vmem>>, vector<4x72xbf16>
    %cst_36 = arith.constant dense<0.000000e+00> : vector<4x256xf32>
    %102 = tpu.matmul %101, %100, %cst_36 {dimension_numbers = #tpu.dot_dimension_numbers<[1], [0], [0], [1], [0, 0, 1, 1], [], []>} : vector<4x72xbf16>, vector<72x256xbf16>, vector<4x256xf32> -> vector<4x256xf32>
    %c0_37 = arith.constant 0 : index
    %c0_38 = arith.constant 0 : index
    %103 = vector.load %arg10[%c0_37, %c0_38] : memref<4x1xf32, #tpu.memory_space<vmem>>, vector<4x1xf32>
    %104 = vector.broadcast %103 : vector<4x1xf32> to vector<4x256xf32>
    %105 = arith.addf %102, %104 : vector<4x256xf32>
    %cst_39 = arith.constant 0.000000e+00 : f32
    %106 = vector.broadcast %cst_39 : f32 to vector<4x256xf32>
    %107 = arith.maximumf %105, %106 : vector<4x256xf32>
    %c0_40 = arith.constant 0 : index
    %c8 = arith.constant 8 : index
    %c0_41 = arith.constant 0 : index
    %108 = vector.load %arg13[%c0_40, %c8, %c0_41] : memref<1x12x256xf32, #tpu.memory_space<vmem>>, vector<1x4x256xf32>
    %109 = vector.shape_cast %108 : vector<1x4x256xf32> to vector<4x256xf32>
    %110 = vector.shape_cast %107 : vector<4x256xf32> to vector<1x4x256xf32>
    tpu.vector_store %arg13[%c0_40, %c8, %c0_41], %110 {strides = array<i32>} : memref<1x12x256xf32, #tpu.memory_space<vmem>>, vector<1x4x256xf32>,
    %111 = arith.truncf %107 : vector<4x256xf32> to vector<4x256xbf16>
    %112 = tpu.concatenate %59, %111 in 0 : vector<8x256xbf16>, vector<4x256xbf16> -> vector<12x256xbf16>
    %c0_42 = arith.constant 0 : index
    %c0_43 = arith.constant 0 : index
    %113 = vector.load %arg11[%c0_42, %c0_43] : memref<6x12xbf16, #tpu.memory_space<vmem>>, vector<6x12xbf16>
    %cst_44 = arith.constant dense<0.000000e+00> : vector<6x256xf32>
    %114 = tpu.matmul %113, %112, %cst_44 {dimension_numbers = #tpu.dot_dimension_numbers<[1], [0], [0], [1], [0, 0, 1, 1], [], []>} : vector<6x12xbf16>, vector<12x256xbf16>, vector<6x256xf32> -> vector<6x256xf32>
    %c0_45 = arith.constant 0 : index
    %c0_46 = arith.constant 0 : index
    %115 = vector.load %arg12[%c0_45, %c0_46] : memref<6x1xf32, #tpu.memory_space<vmem>>, vector<6x1xf32>
    %116 = vector.broadcast %115 : vector<6x1xf32> to vector<6x256xf32>
    %117 = arith.addf %114, %116 : vector<6x256xf32>
    %cst_47 = arith.constant 0.000000e+00 : f32
    %118 = vector.broadcast %cst_47 : f32 to vector<6x256xf32>
    %119 = arith.maximumf %117, %118 : vector<6x256xf32>
    %c0_48 = arith.constant 0 : index
    %c0_49 = arith.constant 0 : index
    %c0_50 = arith.constant 0 : index
    %120 = vector.load %arg14[%c0_48, %c0_49, %c0_50] : memref<1x6x256xf32, #tpu.memory_space<vmem>>, vector<1x6x256xf32>
    %121 = vector.shape_cast %120 : vector<1x6x256xf32> to vector<6x256xf32>
    %122 = vector.shape_cast %119 : vector<6x256xf32> to vector<1x6x256xf32>
    tpu.vector_store %arg14[%c0_48, %c0_49, %c0_50], %122 {strides = array<i32>} : memref<1x6x256xf32, #tpu.memory_space<vmem>>, vector<1x6x256xf32>,
    return
  }
  func.func @transform_0(%arg0: i32) -> (i32, i32) {
    %c0_i32 = arith.constant 0 : i32
    %c0_i32_0 = arith.constant 0 : i32
    %c0_i32_1 = arith.constant 0 : i32
    return %c0_i32, %c0_i32_0 : i32, i32
  }
  func.func @transform_1(%arg0: i32) -> (i32, i32, i32) {
    %c0_i32 = arith.constant 0 : i32
    %c0_i32_0 = arith.constant 0 : i32
    %c0_i32_1 = arith.constant 0 : i32
    return %arg0, %c0_i32, %c0_i32_0 : i32, i32, i32
  }
  func.func @transform_2(%arg0: i32) -> (i32, i32) {
    %c0_i32 = arith.constant 0 : i32
    %c0_i32_0 = arith.constant 0 : i32
    %c0_i32_1 = arith.constant 0 : i32
    return %c0_i32, %c0_i32_0 : i32, i32
  }
  func.func @transform_3(%arg0: i32) -> (i32, i32) {
    %c0_i32 = arith.constant 0 : i32
    %c0_i32_0 = arith.constant 0 : i32
    %c0_i32_1 = arith.constant 0 : i32
    return %c0_i32, %c0_i32_0 : i32, i32
  }
  func.func @transform_4(%arg0: i32) -> (i32, i32) {
    %c0_i32 = arith.constant 0 : i32
    %c0_i32_0 = arith.constant 0 : i32
    %c0_i32_1 = arith.constant 0 : i32
    return %c0_i32, %c0_i32_0 : i32, i32
  }
  func.func @transform_5(%arg0: i32) -> (i32, i32) {
    %c0_i32 = arith.constant 0 : i32
    %c0_i32_0 = arith.constant 0 : i32
    %c0_i32_1 = arith.constant 0 : i32
    return %c0_i32, %c0_i32_0 : i32, i32
  }
  func.func @transform_6(%arg0: i32) -> (i32, i32) {
    %c0_i32 = arith.constant 0 : i32
    %c0_i32_0 = arith.constant 0 : i32
    %c0_i32_1 = arith.constant 0 : i32
    return %c0_i32, %c0_i32_0 : i32, i32
  }
  func.func @transform_7(%arg0: i32) -> (i32, i32) {
    %c0_i32 = arith.constant 0 : i32
    %c0_i32_0 = arith.constant 0 : i32
    %c0_i32_1 = arith.constant 0 : i32
    return %c0_i32, %c0_i32_0 : i32, i32
  }
  func.func @transform_8(%arg0: i32) -> (i32, i32) {
    %c0_i32 = arith.constant 0 : i32
    %c0_i32_0 = arith.constant 0 : i32
    %c0_i32_1 = arith.constant 0 : i32
    return %c0_i32, %c0_i32_0 : i32, i32
  }
  func.func @transform_9(%arg0: i32) -> (i32, i32) {
    %c0_i32 = arith.constant 0 : i32
    %c0_i32_0 = arith.constant 0 : i32
    %c0_i32_1 = arith.constant 0 : i32
    return %c0_i32, %c0_i32_0 : i32, i32
  }
  func.func @transform_10(%arg0: i32) -> (i32, i32) {
    %c0_i32 = arith.constant 0 : i32
    %c0_i32_0 = arith.constant 0 : i32
    %c0_i32_1 = arith.constant 0 : i32
    return %c0_i32, %c0_i32_0 : i32, i32
  }
  func.func @transform_11(%arg0: i32) -> (i32, i32) {
    %c0_i32 = arith.constant 0 : i32
    %c0_i32_0 = arith.constant 0 : i32
    %c0_i32_1 = arith.constant 0 : i32
    return %c0_i32, %c0_i32_0 : i32, i32
  }
  func.func @transform_12(%arg0: i32) -> (i32, i32, i32) {
    %c0_i32 = arith.constant 0 : i32
    %c0_i32_0 = arith.constant 0 : i32
    %c0_i32_1 = arith.constant 0 : i32
    return %arg0, %c0_i32, %c0_i32_0 : i32, i32, i32
  }
  func.func @transform_13(%arg0: i32) -> (i32, i32, i32) {
    %c0_i32 = arith.constant 0 : i32
    %c0_i32_0 = arith.constant 0 : i32
    %c0_i32_1 = arith.constant 0 : i32
    return %arg0, %c0_i32, %c0_i32_0 : i32, i32, i32
  }
}

</mosaic_0001>

<bundles_post_ra>
// kernel: block_normal_forward.1
= control target key start
LH: loop header
LB: loop body
LE: loop exit
PB: predicated region body
PF: predicated region fallthrough
CT: control target
= control target key end

     0   :  { %s1267_s25 = smov 0   ;;  %s1586_s0 = inlined_call_operand.vmem [shape: f32[8,256], index: 0, kind: input, shape index: {}]   ;;  %s1587_s1 = inlined_call_operand.vmem [shape: f32[2,4,256], index: 1, kind: input, shape index: {}]   ;;  %s1588_s2 = inlined_call_operand.vmem [shape: bf16[4,4], index: 2, kind: input, shape index: {}]   ;;  %s1589_s3 = inlined_call_operand.vmem [shape: f32[4,1], index: 3, kind: input, shape index: {}]   ;;  %s1590_s4 = inlined_call_operand.vmem [shape: bf16[4,36], index: 4, kind: input, shape index: {}]   ;;  %s1591_s5 = inlined_call_operand.vmem [shape: f32[4,1], index: 5, kind: input, shape index: {}]   ;;  %s1592_s6 = inlined_call_operand.vmem [shape: bf16[8,8], index: 6, kind: input, shape index: {}]   ;;  %s1593_s7 = inlined_call_operand.vmem [shape: f32[8,1], index: 7, kind: input, shape index: {}]   ;;  %s1594_s8 = inlined_call_operand.vmem [shape: bf16[4,72], index: 8, kind: input, shape index: {}]   ;;  %s1595_s9 = inlined_call_operand.vmem [shape: f32[4,1], index: 9, kind: input, shape index: {}]   ;;  %s1596_s10 = inlined_call_operand.vmem [shape: bf16[6,12], index: 10, kind: input, shape index: {}]   ;;  %s1597_s11 = inlined_call_operand.vmem [shape: f32[6,1], index: 11, kind: input, shape index: {}]   ;;  %s1598_s12 = inlined_call_operand.vmem [shape: f32[2,12,256], index: 12, kind: output, shape index: {0}]   ;;  %s1599_s13 = inlined_call_operand.vmem [shape: f32[2,6,256], index: 13, kind: output, shape index: {1}]  }
   0x1 LB: > { %s1134_s26 = sadd.s32 4294967295, %s1186_s25   ;;  %p1138_p0 = scmp.ge.s32.totalorder %s1186_s25, 1  ;;  %s1186_s25 = sphi %s1267_s25, %s24_s25  }
   0x2   : > { %p390_p1 = scmp.lt.s32.totalorder %s1186_s25, 3 }
   0x4   : > { %p391_p2 = pnand %p1138_p0, %p390_p1 }
   0x5   : > { %p439_p3 = scmp.lt.s32.totalorder (!%p391_p2), %s1134_s26, 1  ;;  %s1189_s22 = smov (!%p391_p2), 127  }
   0x6   : > { %394 = sbr.rel (%p391_p2) target bundleno = 1340 (0x53c), region = 68  ;;  %s1190_s23 = smov (!%p391_p2), 111  }
   0x7   : > { %s1191_s24 = smov (!%p391_p2), 112   ;;  %s1192_s27 = smov (!%p391_p2), 113  }
   0x8   : > { %s1193_s28 = smov (!%p391_p2), 16   ;;  %s1196_s14 = smov (!%p391_p2), 15  }
   0xb   : > { %v1188_v0 = vmov 0   ;;  %v466_v1 = vld [vmem:[%s1589_s3] sm:$0xf]  ;;  %s1601_s26 = smov (!%p439_p3, %s1134_s26), 1  ;;  %vm476_vm0 = vcmask 1041408   ;;  %vm472_vm1 = vcmask 31744   ;;  %v530_v19 = vlaneseq }
   0xc   : > { %515 = vmatprep.mubr.bf16.mxu1 %v1188_v0  ;;  %1177 = vset.pattern.permute.xlu0 %v1188_v0  ;;  %s1157_s29 = sshll.u32 %s1601_s26, 3  ;;  %s1158_s30 = sshll.u32 %s1601_s26, 5  ;;  %v465_v7 = vld [vmem:[%s1588_s2] sm:$0x3]  ;;  %v456_v28 = vld [vmem:[%s1586_s0 + $0x8] sm:$0xff]  ;;  %vm688_vm5 = vcmask 1043456  }
   0xd   : > { %469 = vperm.xlu0 %1177, %v466_v1   ;;  %1178 = vset.pattern.permute.xlu1 %v1188_v0  ;;  %s443_s16 = scalar_lea.vmem %s1587_s1, %s1157_s29  ;;  %s1292_s19 = scalar_lea.vmem %s1598_s12, %s1158_s30  ;;  %v782_v17 = vld [vmem:[%s1593_s7] sm:$0xff]  ;;  %v536_v22 = vshrl.u32 %v530_v19, 7  ;;  %v1352_v25 = vand.u32 127, %v530_v19  ;;  %vm710_vm11 = vcmask 293888   ;;  %vm788_vm12 = vcmask 64512  }
   0xe   : > { %828 = vmatprep.mubr.bf16.mxu0 %v1188_v0  ;;  %v457_v2 = vld [vmem:[%s443_s16] sm:$0xff]  ;;  %s1194_s29 = smov 1   ;;  %s1195_s30 = smov 17   ;;  %vm920_vm13 = vcmask 588800   ;;  %vm996_vm14 = vcmask 1045504   ;;  %vm992_vm15 = vcmask 97280  }
   0xf   : > { %v459_v3 = vcombine.high %v457_v2, %v457_v2  ;;  %461 = vst [vmem:[%s1292_s19] sm:$0xf] %v457_v2  ;;  %v1295_v4 = vpack.c.bf16 %v457_v2, %v457_v2  ;;  %v704_v18 = vld [vmem:[%s1591_s5] sm:$0xf]  ;;  %v605_v26 = vsub.s32 4, %v536_v22  ;;  %v639_v30 = vsub.s32 6, %v536_v22  ;;  %s1159_s15 = sshll.u32 %s1601_s26, 4 }
  0x10   : > { %v455_v27 = vld [vmem:[%s1586_s0] sm:$0xff]  ;;  %v622_v32 = vsub.s32 5, %v536_v22  ;;  %v554_v33 = vsub.s32 1, %v536_v22  ;;  %vm600_vm2 = vcmp.lt.s32.totalorder %v1352_v25, 127  ;;  %vm634_vm3 = vcmp.lt.s32.totalorder %v1352_v25, 112  ;;  %s453_s17 = scalar_lea.vmem %s1599_s13, %s1159_s15 }
  0x11   : > { %462 = vst [vmem:[%s1292_s19 + $0x8] sm:$0xf] %v459_v3  ;;  %v1298_v5 = vpack.c.bf16 %v459_v3, %v459_v3  ;;  %v478_v6 = vsel %vm476_vm0, %v1295_v4, 0  ;;  %v1361_v34 = vrot.slane %v455_v27, %v605_v26  ;;  %v1363_v35 = vrot.slane %v456_v28, %v605_v26 }
  0x12   : > { %v656_v36 = vsub.s32 7, %v536_v22  ;;  %v1366_v37 = vrot.slane %v455_v27, %v639_v30  ;;  %v1368_v38 = vrot.slane %v456_v28, %v639_v30  ;;  %vm617_vm4 = vcmp.lt.s32.totalorder %v1352_v25, 113 }
  0x13   : > { %1145 = vmatprep.subr.msk.bf16.mxu1 %vm476_vm0, %v1298_v5  ;;  %v1371_v40 = vrot.slane %v455_v27, %v622_v32  ;;  %v1375_v43 = vrot.slane %v456_v28, %v622_v32  ;;  %vm549_vm6 = vcmp.lt.s32.totalorder %v1352_v25, 16  ;;  %v1378_v44 = vrot.slane %v455_v27, %v554_v33 }
  0x14   : > { %498 = vmatpush1.bf16.msra.mxu1 %v478_v6  ;;  %v588_v47 = vsub.s32 3, %v536_v22  ;;  %v537_v48 = vsub.s32 0, %v536_v22  ;;  %v1384_v49 = vrot.slane %v456_v28, %v554_v33  ;;  %vm651_vm7 = vcmp.lt.s32.totalorder %v1352_v25, 111 }
  0x15   : > { %v1387_v50 = vrot.slane %v455_v27, %v656_v36  ;;  %v1389_v51 = vrot.slane %v456_v28, %v656_v36  ;;  %v571_v57 = vsub.s32 2, %v536_v22  ;;  %vm583_vm8 = vcmp.lt.s32.totalorder %v1352_v25, 1 }
  0x16   : > { %v1401_v61 = vrot.slane %v455_v27, %v588_v47  ;;  %v1403_v62 = vrot.slane %v456_v28, %v588_v47  ;;  %vm532_vm9 = vcmp.lt.s32.totalorder %v1352_v25, 17  ;;  %v1406_v63 = vrot.slane %v455_v27, %v537_v48 }
  0x17   : > { %1146 = vmatmul.mubr.msk.bf16.vlgmr.msra.gmra.mxu1 %vm472_vm1, %v465_v7  ;;  %v1410_v3 = vrot.slane %v456_v28, %v537_v48  ;;  %vm566_vm10 = vcmp.lt.s32.totalorder %v1352_v25, 15 }
  0x18   : > { %752 = vmatprep.mubr.bf16.mxu1 %v1188_v0 }
  0x88   : > { %v470_v8 = vpop.permute.xlu0 %469 }
  0xd7   : > { %v517_v9 = vpop.f32.mrf.mxu1 }
  0xd8   : > { %v518_v10 = vadd.f32 %v517_v9, %v470_v8 }
  0xd9   : > { %v519_v11 = vpop.f32.mrf.mxu1 }
  0xda   : > { %v1308_v12 = vmax.f32 %v518_v10, 0.0  ;;  %v520_v13 = vadd.f32 %v519_v11, %v470_v8  ;;  %v1414_v10 = vrot.slane %v455_v27, %v571_v57  ;;  %v1416_v11 = vrot.slane %v456_v28, %v571_v57 }
  0xdb   : > { %v521_v14 = vpop.f32.mrf.mxu1 }
  0xdc   : > { %596 = vrot.lane.b32.xlu1 %v1308_v12, %s1189_s22  ;;  %647 = vrot.lane.b32.xlu0 %v1308_v12, %s1190_s23  ;;  %v1314_v16 = vmax.f32 %v520_v13, 0.0 }
  0xdd   : > { %v522_v15 = vpop.f32.mrf.mxu1 }
  0xe0   : > { %630 = vrot.lane.b32.xlu1 %v1308_v12, %s1191_s24  ;;  %598 = vrot.lane.b32.xlu0 %v1314_v16, %s1189_s22 }
  0xe4   : > { %613 = vrot.lane.b32.xlu1 %v1308_v12, %s1192_s27  ;;  %632 = vrot.lane.b32.xlu0 %v1314_v16, %s1191_s24 }
  0xe8   : > { %545 = vrot.lane.b32.xlu1 %v1308_v12, %s1193_s28  ;;  %615 = vrot.lane.b32.xlu0 %v1314_v16, %s1192_s27 }
  0xec   : > { %579 = vrot.lane.b32.xlu1 %v1308_v12, %s1194_s29  ;;  %547 = vrot.lane.b32.xlu0 %v1314_v16, %s1193_s28 }
  0xf0   : > { %649 = vrot.lane.b32.xlu1 %v1314_v16, %s1190_s23  ;;  %581 = vrot.lane.b32.xlu0 %v1314_v16, %s1194_s29 }
  0xf4   : > { %526 = vrot.lane.b32.xlu1 %v1308_v12, %s1195_s30  ;;  %528 = vrot.lane.b32.xlu0 %v1314_v16, %s1195_s30 }
  0xf8   : > { %562 = vrot.lane.b32.xlu1 %v1308_v12, %s1196_s14  ;;  %564 = vrot.lane.b32.xlu0 %v1314_v16, %s1196_s14 }
  0xfc   : > { %785 = vperm.xlu0 %1177, %v782_v17   ;;  %707 = vperm.xlu1 %1178, %v704_v18  }
 0x14e   : > { %v597_v20 = vpop.permute.xlu1 %596  ;;  %v1350_v21 = vpop.permute.xlu0 %647 }
 0x152   : > { %v631_v23 = vpop.permute.xlu1 %630  ;;  %v599_v24 = vpop.permute.xlu0 %598 }
 0x153   : > { %v602_v42 = vsel %vm600_vm2, %v599_v24, %v597_v20  ;;  %v601_v52 = vsel %vm600_vm2, %v597_v20, %v599_v24 }
 0x154   : > { %v612_v53 = vmul.f32 %v1363_v35, %v602_v42  ;;  %v611_v1 = vmul.f32 %v1361_v34, %v601_v52 }
 0x156   : > { %v614_v29 = vpop.permute.xlu1 %613  ;;  %v633_v31 = vpop.permute.xlu0 %632  ;;  %v679_v6 = vrot.slane %v612_v53, 4 }
 0x157   : > { %v635_v45 = vsel %vm634_vm3, %v631_v23, %v633_v31  ;;  %v636_v46 = vsel %vm634_vm3, %v633_v31, %v631_v23  ;;  %v678_v23 = vrot.slane %v611_v1, 4 }
 0x158   : > { %v645_v58 = vmul.f32 %v1366_v37, %v635_v45  ;;  %v646_v59 = vmul.f32 %v1368_v38, %v636_v46  ;;  %v694_v32 = vsel %vm688_vm5, %v1314_v16, %v679_v6 }
 0x159   : > { %v693_v16 = vsel %vm688_vm5, %v1308_v12, %v678_v23 }
 0x15a   : > { %v546_v39 = vpop.permute.xlu1 %545  ;;  %v616_v41 = vpop.permute.xlu0 %615  ;;  %v684_v13 = vrot.slane %v645_v58, 4  ;;  %v685_v14 = vrot.slane %v646_v59, 4 }
 0x15b   : > { %v619_v54 = vsel %vm617_vm4, %v616_v41, %v614_v29  ;;  %v618_v60 = vsel %vm617_vm4, %v614_v29, %v616_v41 }
 0x15c   : > { %v629_v2 = vmul.f32 %v1375_v43, %v619_v54  ;;  %v628_v7 = vmul.f32 %v1371_v40, %v618_v60 }
 0x15e   : > { %v580_v55 = vpop.permute.xlu1 %579  ;;  %v548_v56 = vpop.permute.xlu0 %547  ;;  %v696_v27 = vsel %vm688_vm5, %v629_v2, %v685_v14 }
 0x15f   : > { %v550_v18 = vsel %vm549_vm6, %v546_v39, %v548_v56  ;;  %v551_v19 = vsel %vm549_vm6, %v548_v56, %v546_v39  ;;  %v700_v47 = vpack.c.bf16 %v696_v27, %v694_v32 }
 0x160   : > { %v560_v33 = vmul.f32 %v1378_v44, %v551_v19  ;;  %v561_v36 = vmul.f32 %v1384_v49, %v550_v18 }
 0x162   : > { %v650_v8 = vpop.permute.xlu1 %649  ;;  %v582_v9 = vpop.permute.xlu0 %581  ;;  %v666_v56 = vrot.slane %v560_v33, 4  ;;  %v667_v57 = vrot.slane %v561_v36, 4 }
 0x163   : > { %v652_v15 = vsel %vm651_vm7, %v1350_v21, %v650_v8  ;;  %v653_v17 = vsel %vm651_vm7, %v650_v8, %v1350_v21  ;;  %v584_v24 = vsel %vm583_vm8, %v580_v55, %v582_v9  ;;  %v585_v26 = vsel %vm583_vm8, %v582_v9, %v580_v55 }
 0x164   : > { %v662_v20 = vmul.f32 %v1387_v50, %v652_v15  ;;  %v663_v22 = vmul.f32 %v1389_v51, %v653_v17  ;;  %v695_v21 = vsel %vm688_vm5, %v628_v7, %v684_v13  ;;  %v594_v42 = vmul.f32 %v1401_v61, %v585_v26  ;;  %v703_v15 = vld [vmem:[%s1590_s4] sm:$0x3] }
 0x165   : > { %v595_v45 = vmul.f32 %v1403_v62, %v584_v24  ;;  %v699_v55 = vpack.c.bf16 %v695_v21, %v693_v16 }
 0x166   : > { %v701_v28 = vpack.c.bf16 %v662_v20, %v662_v20  ;;  %v702_v29 = vpack.c.bf16 %v663_v22, %v663_v22  ;;  %v527_v30 = vpop.permute.xlu1 %526  ;;  %v529_v31 = vpop.permute.xlu0 %528  ;;  %v672_v60 = vrot.slane %v594_v42, 4 }
 0x167   : > { %v533_v39 = vsel %vm532_vm9, %v527_v30, %v529_v31  ;;  %v534_v41 = vsel %vm532_vm9, %v529_v31, %v527_v30  ;;  %v673_v1 = vrot.slane %v595_v45, 4 }
 0x168   : > { %1147 = vmatprep.subr.msk.bf16.mxu1 %vm476_vm0, %v702_v29  ;;  %v715_v46 = vsel %vm476_vm0, %v701_v28, 0  ;;  %v543_v48 = vmul.f32 %v1406_v63, %v534_v41  ;;  %v544_v52 = vmul.f32 %v1410_v3, %v533_v39  ;;  %v781_v41 = vld [vmem:[%s1592_s6] sm:$0xf] }
 0x169   : > { %731 = vmatpush1.bf16.msra.mxu1 %v715_v46 }
 0x16a   : > { %v563_v53 = vpop.permute.xlu1 %562  ;;  %732 = vmatprep.subr.bf16.mxu1 %v700_v47  ;;  %v565_v54 = vpop.permute.xlu0 %564  ;;  %v689_v6 = vsel %vm688_vm5, %v543_v48, %v666_v56  ;;  %v690_v8 = vsel %vm688_vm5, %v544_v52, %v667_v57 }
 0x16b   : > { %v567_v58 = vsel %vm566_vm10, %v563_v53, %v565_v54  ;;  %v568_v59 = vsel %vm566_vm10, %v565_v54, %v563_v53  ;;  %v986_v53 = vld [vmem:[%s1597_s11] sm:$0x3f] }
 0x16c   : > { %v577_v12 = vmul.f32 %v1414_v10, %v568_v59  ;;  %v578_v2 = vmul.f32 %v1416_v11, %v567_v58 }
 0x16d   : > { %733 = vmatpush1.bf16.msra.mxu1 %v699_v55 }
 0x16e   : > { %v691_v7 = vsel %vm688_vm5, %v577_v12, %v672_v60  ;;  %v692_v9 = vsel %vm688_vm5, %v578_v2, %v673_v1 }
 0x16f   : > { %v698_v13 = vpack.c.bf16 %v692_v9, %v690_v8  ;;  %v697_v14 = vpack.c.bf16 %v691_v7, %v689_v6 }
 0x171   : > { %734 = vmatprep.subr.bf16.mxu1 %v698_v13 }
 0x172   : > { %735 = vmatpush1.bf16.msra.mxu1 %v697_v14 }
 0x175   : > { %1148 = vmatmul.mubr.msk.bf16.vlgmr.msra.gmra.mxu1 %vm710_vm11, %v703_v15 }
 0x176   : > { %1033 = vmatprep.mubr.bf16.mxu1 %v1188_v0 }
 0x177   : > { %v708_v17 = vpop.permute.xlu1 %707 }
 0x235   : > { %v754_v18 = vpop.f32.mrf.mxu1 }
 0x236   : > { %v755_v19 = vadd.f32 %v754_v18, %v708_v17 }
 0x237   : > { %v756_v20 = vpop.f32.mrf.mxu1 }
 0x238   : > { %v761_v22 = vmax.f32 %v755_v19, 0.0  ;;  %v757_v23 = vadd.f32 %v756_v20, %v708_v17 }
 0x239   : > { %v758_v24 = vpop.f32.mrf.mxu1 }
 0x23a   : > { %v765_v26 = vrot.slane %v761_v22, 4  ;;  %v771_v27 = vpack.c.bf16 %v761_v22, %v761_v22  ;;  %v762_v21 = vmax.f32 %v757_v23, 0.0 }
 0x23b   : > { %v759_v28 = vpop.f32.mrf.mxu1 }
 0x23c   : > { %769 = vst [vmem:[%s1292_s19] sm:$0xf0] %v765_v26  ;;  %v775_v29 = vrot.slane %v771_v27, 6  ;;  %v766_v30 = vrot.slane %v762_v21, 4  ;;  %v772_v31 = vpack.c.bf16 %v762_v21, %v762_v21 }
 0x23e   : > { %770 = vst [vmem:[%s1292_s19 + $0x8] sm:$0xf0] %v766_v30  ;;  %v776_v32 = vrot.slane %v772_v31, 6  ;;  %v1470_v33 = vsel %vm476_vm0, %v1295_v4, %v775_v29  ;;  %v786_v4 = vpop.permute.xlu0 %785 }
 0x23f   : > { %v792_v39 = vsel %vm688_vm5, %v1470_v33, 0 }
 0x240   : > { %v1474_v36 = vsel %vm476_vm0, %v1298_v5, %v776_v32 }
 0x241   : > { %1149 = vmatprep.subr.msk.bf16.mxu0 %vm688_vm5, %v1474_v36 }
 0x242   : > { %811 = vmatpush1.bf16.msra.mxu0 %v792_v39 }
 0x245   : > { %1150 = vmatmul.mubr.msk.bf16.vlgmr.msra.gmra.mxu0 %vm788_vm12, %v781_v41 }
 0x246   : > { %962 = vmatprep.mubr.bf16.mxu0 %v1188_v0  ;;  %v914_v0 = vld [vmem:[%s1595_s9] sm:$0xf] }
 0x305   : > { %v830_v42 = vpop.f32.mrf.mxu0 }
 0x306   : > { %v831_v45 = vadd.f32 %v830_v42, %v786_v4 }
 0x307   : > { %v832_v5 = vpop.f32.mrf.mxu0 }
 0x308   : > { %v1484_v46 = vmax.f32 %v831_v45, 0.0  ;;  %v833_v47 = vadd.f32 %v832_v5, %v786_v4 }
 0x309   : > { %v834_v16 = vpop.f32.mrf.mxu0 }
 0x30a   : > { %v838_v48 = vmax.f32 %v833_v47, 0.0  ;;  %895 = vrot.lane.b32.xlu1 %v1484_v46, %s1190_s23 }
 0x30b   : > { %v835_v52 = vpop.f32.mrf.mxu0 }
 0x30c   : > { %897 = vrot.lane.b32.xlu0 %v838_v48, %s1190_s23 }
 0x30e   : > { %879 = vrot.lane.b32.xlu1 %v1484_v46, %s1192_s27 }
 0x310   : > { %881 = vrot.lane.b32.xlu0 %v838_v48, %s1192_s27 }
 0x312   : > { %887 = vrot.lane.b32.xlu1 %v1484_v46, %s1191_s24 }
 0x314   : > { %889 = vrot.lane.b32.xlu0 %v838_v48, %s1191_s24 }
 0x316   : > { %871 = vrot.lane.b32.xlu1 %v1484_v46, %s1189_s22 }
 0x318   : > { %873 = vrot.lane.b32.xlu0 %v838_v48, %s1189_s22 }
 0x31a   : > { %855 = vrot.lane.b32.xlu1 %v1484_v46, %s1196_s14 }
 0x31c   : > { %857 = vrot.lane.b32.xlu0 %v838_v48, %s1196_s14 }
 0x31e   : > { %863 = vrot.lane.b32.xlu1 %v1484_v46, %s1194_s29 }
 0x320   : > { %865 = vrot.lane.b32.xlu0 %v838_v48, %s1194_s29 }
 0x322   : > { %839 = vrot.lane.b32.xlu1 %v1484_v46, %s1195_s30 }
 0x324   : > { %841 = vrot.lane.b32.xlu0 %v838_v48, %s1195_s30 }
 0x326   : > { %847 = vrot.lane.b32.xlu1 %v1484_v46, %s1193_s28 }
 0x328   : > { %849 = vrot.lane.b32.xlu0 %v838_v48, %s1193_s28 }
 0x32a   : > { %917 = vperm.xlu1 %1178, %v914_v0  }
 0x32c   : > { %989 = vperm.xlu0 %1177, %v986_v53  }
 0x37c   : > { %v896_v54 = vpop.permute.xlu1 %895 }
 0x37e   : > { %v898_v55 = vpop.permute.xlu0 %897 }
 0x37f   : > { %v899_v56 = vsel %vm651_vm7, %v896_v54, %v898_v55  ;;  %v900_v57 = vsel %vm651_vm7, %v898_v55, %v896_v54 }
 0x380   : > { %v901_v58 = vmul.f32 %v899_v56, %v1387_v50  ;;  %v902_v59 = vmul.f32 %v900_v57, %v1389_v51  ;;  %v880_v60 = vpop.permute.xlu1 %879  ;;  %v913_v56 = vld [vmem:[%s1594_s8] sm:$0x3] }
 0x382   : > { %v911_v1 = vpack.c.bf16 %v901_v58, %v901_v58  ;;  %v912_v12 = vpack.c.bf16 %v902_v59, %v902_v59  ;;  %v882_v2 = vpop.permute.xlu0 %881 }
 0x383   : > { %v883_v8 = vsel %vm617_vm4, %v880_v60, %v882_v2  ;;  %v884_v9 = vsel %vm617_vm4, %v882_v2, %v880_v60 }
 0x384   : > { %1151 = vmatprep.subr.msk.bf16.mxu0 %vm688_vm5, %v912_v12  ;;  %v888_v6 = vpop.permute.xlu1 %887  ;;  %v925_v7 = vsel %vm688_vm5, %v911_v1, 0  ;;  %v885_v14 = vmul.f32 %v883_v8, %v1371_v40  ;;  %v886_v15 = vmul.f32 %v884_v9, %v1375_v43 }
 0x385   : > { %937 = vmatpush1.bf16.msra.mxu0 %v925_v7 }
 0x386   : > { %v890_v13 = vpop.permute.xlu0 %889 }
 0x387   : > { %v891_v50 = vsel %vm634_vm3, %v888_v6, %v890_v13  ;;  %v892_v51 = vsel %vm634_vm3, %v890_v13, %v888_v6  ;;  %v985_v13 = vld [vmem:[%s1596_s10] sm:$0x7] }
 0x388   : > { %v893_v17 = vmul.f32 %v891_v50, %v1366_v37  ;;  %v894_v18 = vmul.f32 %v892_v51, %v1368_v38  ;;  %v872_v19 = vpop.permute.xlu1 %871 }
 0x38a   : > { %v909_v20 = vpack.c.bf16 %v893_v17, %v885_v14  ;;  %v874_v22 = vpop.permute.xlu0 %873  ;;  %v910_v23 = vpack.c.bf16 %v894_v18, %v886_v15 }
 0x38b   : > { %v875_v24 = vsel %vm600_vm2, %v872_v19, %v874_v22  ;;  %v876_v26 = vsel %vm600_vm2, %v874_v22, %v872_v19 }
 0x38c   : > { %v877_v27 = vmul.f32 %v875_v24, %v1361_v34  ;;  %v878_v40 = vmul.f32 %v876_v26, %v1363_v35  ;;  %938 = vmatprep.subr.bf16.mxu0 %v910_v23  ;;  %v856_v43 = vpop.permute.xlu1 %855 }
 0x38d   : > { %939 = vmatpush1.bf16.msra.mxu0 %v909_v20 }
 0x38e   : > { %v907_v37 = vpack.c.bf16 %v877_v27, %v1484_v46  ;;  %v858_v38 = vpop.permute.xlu0 %857  ;;  %v908_v21 = vpack.c.bf16 %v878_v40, %v838_v48 }
 0x38f   : > { %v859_v29 = vsel %vm566_vm10, %v856_v43, %v858_v38  ;;  %v860_v30 = vsel %vm566_vm10, %v858_v38, %v856_v43 }
 0x390   : > { %940 = vmatprep.subr.bf16.mxu0 %v908_v21  ;;  %v864_v28 = vpop.permute.xlu1 %863  ;;  %v861_v32 = vmul.f32 %v860_v30, %v1414_v10  ;;  %v862_v39 = vmul.f32 %v859_v29, %v1416_v11 }
 0x391   : > { %941 = vmatpush1.bf16.msra.mxu0 %v907_v37 }
 0x392   : > { %v866_v31 = vpop.permute.xlu0 %865 }
 0x393   : > { %v867_v34 = vsel %vm583_vm8, %v864_v28, %v866_v31  ;;  %v868_v35 = vsel %vm583_vm8, %v866_v31, %v864_v28 }
 0x394   : > { %v869_v41 = vmul.f32 %v868_v35, %v1401_v61  ;;  %v870_v4 = vmul.f32 %v867_v34, %v1403_v62  ;;  %v840_v42 = vpop.permute.xlu1 %839 }
 0x396   : > { %v905_v45 = vpack.c.bf16 %v869_v41, %v861_v32  ;;  %v842_v5 = vpop.permute.xlu0 %841  ;;  %v906_v46 = vpack.c.bf16 %v870_v4, %v862_v39 }
 0x397   : > { %v843_v47 = vsel %vm532_vm9, %v840_v42, %v842_v5  ;;  %v844_v16 = vsel %vm532_vm9, %v842_v5, %v840_v42 }
 0x398   : > { %942 = vmatprep.subr.bf16.mxu0 %v906_v46  ;;  %v848_v48 = vpop.permute.xlu1 %847  ;;  %v845_v62 = vmul.f32 %v844_v16, %v1406_v63  ;;  %v846_v52 = vmul.f32 %v843_v47, %v1410_v3 }
 0x399   : > { %943 = vmatpush1.bf16.msra.mxu0 %v905_v45 }
 0x39a   : > { %v850_v10 = vpop.permute.xlu0 %849 }
 0x39b   : > { %v851_v11 = vsel %vm549_vm6, %v848_v48, %v850_v10  ;;  %v852_v61 = vsel %vm549_vm6, %v850_v10, %v848_v48 }
 0x39c   : > { %v853_v0 = vmul.f32 %v852_v61, %v1378_v44  ;;  %v854_v53 = vmul.f32 %v851_v11, %v1384_v49 }
 0x39e   : > { %v903_v54 = vpack.c.bf16 %v853_v0, %v845_v62  ;;  %v904_v55 = vpack.c.bf16 %v854_v53, %v846_v52 }
 0x3a0   : > { %944 = vmatprep.subr.bf16.mxu0 %v904_v55 }
 0x3a1   : > { %945 = vmatpush1.bf16.msra.mxu0 %v903_v54 }
 0x3a4   : > { %1152 = vmatmul.mubr.msk.bf16.vlgmr.msra.gmra.mxu0 %vm920_vm13, %v913_v56 }
 0x3a5   : > { %v918_v25 = vpop.permute.xlu1 %917 }
 0x3a7   : > { %v990_v50 = vpop.permute.xlu0 %989 }
 0x464   : > { %v964_v63 = vpop.f32.mrf.mxu0 }
 0x465   : > { %v965_v57 = vadd.f32 %v964_v63, %v918_v25 }
 0x466   : > { %v966_v3 = vpop.f32.mrf.mxu0 }
 0x467   : > { %v971_v58 = vmax.f32 %v965_v57, 0.0  ;;  %v967_v44 = vadd.f32 %v966_v3, %v918_v25 }
 0x468   : > { %v968_v59 = vpop.f32.mrf.mxu0 }
 0x469   : > { %973 = vst [vmem:[%s1292_s19 + $0x10] sm:$0xf] %v971_v58  ;;  %v975_v49 = vpack.c.bf16 %v971_v58, %v971_v58  ;;  %v972_v60 = vmax.f32 %v967_v44, 0.0 }
 0x46a   : > { %v969_v1 = vpop.f32.mrf.mxu0 }
 0x46b   : > { %v979_v12 = vrot.slane %v975_v49, 4  ;;  %974 = vst [vmem:[%s1292_s19 + $0x18] sm:$0xf] %v972_v60  ;;  %v976_v2 = vpack.c.bf16 %v972_v60, %v972_v60 }
 0x46d   : > { %v980_v6 = vrot.slane %v976_v2, 4  ;;  %v982_v7 = vsel %vm688_vm5, %v1470_v33, %v979_v12 }
 0x46e   : > { %v997_v9 = vsel %vm996_vm14, %v982_v7, 0 }
 0x46f   : > { %v984_v8 = vsel %vm688_vm5, %v1474_v36, %v980_v6 }
 0x470   : > { %1153 = vmatprep.subr.msk.bf16.mxu1 %vm996_vm14, %v984_v8 }
 0x471   : > { %1016 = vmatpush1.bf16.msra.mxu1 %v997_v9 }
 0x474   : > { %1154 = vmatmul.mubr.msk.bf16.vlgmr.msra.gmra.mxu1 %vm992_vm15, %v985_v13 }
 0x534   : > { %v1035_v51 = vpop.f32.mrf.mxu1 }
 0x535   : > { %v1036_v14 = vadd.f32 %v1035_v51, %v990_v50 }
 0x536   : > { %v1037_v33 = vpop.f32.mrf.mxu1 }
 0x537   : > { %v1042_v15 = vmax.f32 %v1036_v14, 0.0  ;;  %v1038_v36 = vadd.f32 %v1037_v33, %v990_v50 }
 0x538   : > { %v1039_v17 = vpop.f32.mrf.mxu1 }
 0x539   : > { %1044 = vst [vmem:[%s453_s17] sm:$0x3f] %v1042_v15  ;;  %v1043_v18 = vmax.f32 %v1038_v36, 0.0 }
 0x53a   : > { %v1040_v19 = vpop.f32.mrf.mxu1 }
 0x53b   : > { %1045 = vst [vmem:[%s453_s17 + $0x8] sm:$0x3f] %v1043_v18 }
 0x53c PF: > { %s24_s25 = sadd.s32 1, %s1186_s25  }
 0x53d   : > { %p21_p4 = scmp.ge.s32.totalorder %s24_s25, 4  }
 0x53f   :  { %23 = sbr.rel (!%p21_p4) target bundleno = 1 (0x1), region = 110 }

</bundles_post_ra>
